<compile_context>
chip_gen: v6e
topology: v6e:2x2x1
jax: 0.10.0
libtpu: 0.0.40
codegen_flags: <defaults>
</compile_context>

<pallas_src>
import jax
import jax.numpy as jnp
from jax import lax
from jax.experimental import pallas as pl
from jax.experimental.pallas import tpu as pltpu

IN_DIM = 2048
HID_DIM = 50
OUT_DIM = 1
BN_EPS = 1e-5
_LANES = 8            # fused weight replicated to 8 output columns (tiny writeback)
_TB_MAX = 1024        # max batch-tile rows (8 MiB f32 tile, double-buffered = 16 MiB)
_FUSED_MAX_B = 1024   # single fully fused kernel up to this many rows


def _cdiv(a, b):
    return -(-a // b)


def _round_up(x, m):
    return _cdiv(x, m) * m


# ----------------------------- kernels --------------------------------------

def _fused_kernel(x_ref, w_ref, p_ref, o_ref):
    """Whole forward in one shot (single-block path, B <= fused_max_batch).

    x_ref: (B, IN_DIM) VMEM     w_ref: (IN_DIM, _LANES) VMEM
    p_ref: (3,) SMEM  = [fused dense bias, bn gamma, bn beta]
    o_ref: (B, _LANES) VMEM  (all columns identical; wrapper keeps column 0)
    """
    z = jnp.dot(x_ref[...], w_ref[...], preferred_element_type=jnp.float32)
    z = z + p_ref[0]                                      # fused dense bias
    mean = jnp.mean(z, axis=0, keepdims=True)             # full-batch BN stats
    diff = z - mean
    var = jnp.mean(diff * diff, axis=0, keepdims=True)    # biased variance
    y = p_ref[1] * (diff * lax.rsqrt(var + BN_EPS)) + p_ref[2]
    o_ref[...] = 1.0 / (1.0 + jnp.exp(-y))                # sigmoid


def _matvec_kernel(x_ref, w_ref, z_ref):
    """Streaming tile of the fused matvec (grid path).

    x_ref: (TB, IN_DIM) streamed LHS    w_ref: (IN_DIM, _LANES) resident RHS
    z_ref: (TB, _LANES) f32 (bias added in the finalize kernel).
    """
    z_ref[...] = jnp.dot(x_ref[...], w_ref[...],
                         preferred_element_type=jnp.float32)


def _bn_sigmoid_kernel(z_ref, p_ref, o_ref):
    """Finalize: fused bias + BatchNorm1d (batch statistics) + sigmoid.

    z_ref: (B, _LANES) f32 VMEM    p_ref: (3,) SMEM    o_ref: (B, _LANES)
    """
    # TODO(synk): tile this (two-pass stats) if B ever grows so large that a
    # single (B, 8) f32 block no longer fits VMEM (multi-million rows on v7x).
    z = z_ref[...] + p_ref[0]
    mean = jnp.mean(z, axis=0, keepdims=True)
    diff = z - mean
    var = jnp.mean(diff * diff, axis=0, keepdims=True)
    y = p_ref[1] * (diff * lax.rsqrt(var + BN_EPS)) + p_ref[2]
    o_ref[...] = 1.0 / (1.0 + jnp.exp(-y))


# ----------------------------- wrapper ---------------------------------------

def sema_conf_net(x, w1, b1, w2, b2, gamma, beta, *,
                  block_b=_TB_MAX, fused_max_batch=_FUSED_MAX_B):
    """SemaConfNet forward.  x: (B, 2048) -> (B, 1) f32 probabilities."""
    B = x.shape[0]
    assert x.shape[1] == IN_DIM

    # ---- algebraic fold of dense1 + dense9 (no nonlinearity between them) ----
    w_eff = (w1 @ w2).reshape(IN_DIM, OUT_DIM)              # (2048, 1)
    b_eff = (b1 @ w2 + b2).reshape((OUT_DIM,))              # (1,)
    # Stream x in its incoming dtype (no wrapper-side cast = no extra HBM pass);
    # only the tiny fused weight is cast to match.
    w_rep = jnp.broadcast_to(w_eff, (IN_DIM, _LANES)).astype(x.dtype)
    params = jnp.concatenate(
        [b_eff, gamma.reshape((OUT_DIM,)), beta.reshape((OUT_DIM,))]
    ).astype(jnp.float32)                                   # (3,) SMEM scalars

    # TODO(synk): PyTorch training-mode BatchNorm also updates running_mean /
    # running_var buffers as a side effect; only the forward output is produced.

    bytes_accessed = ((B * IN_DIM + IN_DIM * _LANES) * x.dtype.itemsize
                      + B * _LANES * 4)

    # ---- small-batch path: one fully fused kernel, no intermediate HBM ----
    if B <= fused_max_batch:
        out8 = pl.pallas_call(
            _fused_kernel,
            out_shape=jax.ShapeDtypeStruct((B, _LANES), jnp.float32),
            in_specs=[
                pl.BlockSpec(memory_space=pltpu.VMEM),      # x (whole block)
                pl.BlockSpec(memory_space=pltpu.VMEM),      # fused weight
                pl.BlockSpec(memory_space=pltpu.SMEM),      # scalars
            ],
            out_specs=pl.BlockSpec(memory_space=pltpu.VMEM),
            cost_estimate=pl.CostEstimate(
                flops=2 * B * IN_DIM * _LANES,
                transcendentals=B * _LANES,
                bytes_accessed=bytes_accessed),
        )(x, w_rep, params)
        return out8[:, :OUT_DIM]

    # ---- large-batch path: batch-tiled streaming matvec + tiny finalize ----
    # Balance the tile count to an even number (v7x: 2 TensorCores), keep TB a
    # multiple of 8 (sublane alignment).  The ragged last tile is handled by
    # Pallas block masking — no jnp.pad HBM round-trip.
    nt = _cdiv(B, block_b)
    if nt % 2:
        nt += 1
    tb = min(_round_up(_cdiv(B, nt), 8), _round_up(block_b, 8))
    grid = (_cdiv(B, tb),)

    z_all = pl.pallas_call(
        _matvec_kernel,
        out_shape=jax.ShapeDtypeStruct((B, _LANES), jnp.float32),
        grid=grid,
        in_specs=[
            pl.BlockSpec((tb, IN_DIM), lambda i: (i, 0)),        # streamed x tile
            pl.BlockSpec((IN_DIM, _LANES), lambda i: (0, 0)),    # resident weight
        ],
        out_specs=pl.BlockSpec((tb, _LANES), lambda i: (i, 0)),
        compiler_params=pltpu.CompilerParams(
            dimension_semantics=("parallel",),                   # megacore split
            vmem_limit_bytes=32 * 1024 * 1024),                  # fits TB=1024 x2 bufs
        cost_estimate=pl.CostEstimate(
            flops=2 * B * IN_DIM * _LANES,
            transcendentals=0,
            bytes_accessed=bytes_accessed),
    )(x, w_rep)

    out8 = pl.pallas_call(
        _bn_sigmoid_kernel,
        out_shape=jax.ShapeDtypeStruct((B, _LANES), jnp.float32),
        in_specs=[
            pl.BlockSpec(memory_space=pltpu.VMEM),
            pl.BlockSpec(memory_space=pltpu.SMEM),
        ],
        out_specs=pl.BlockSpec(memory_space=pltpu.VMEM),
    )(z_all, params)
    return out8[:, :OUT_DIM]


# ----------------------------- test harness ----------------------------------

def init_params(key):
    """Deterministic synthetic parameters matching SemaConfNet.__init__ shapes."""
    k1, k2, k3, k4 = jax.random.split(key, 4)
    bound1 = 1.0 / jnp.sqrt(float(IN_DIM))
    bound2 = 1.0 / jnp.sqrt(float(HID_DIM))
    w1 = jax.random.uniform(k1, (IN_DIM, HID_DIM), jnp.float32, -bound1, bound1)
    b1 = jax.random.uniform(k2, (HID_DIM,), jnp.float32, -bound1, bound1)
    w2 = jax.random.uniform(k3, (HID_DIM, OUT_DIM), jnp.float32, -bound2, bound2)
    b2 = jax.random.uniform(k4, (OUT_DIM,), jnp.float32, -bound2, bound2)
    gamma = jnp.ones((OUT_DIM,), jnp.float32)   # BatchNorm1d defaults
    beta = jnp.zeros((OUT_DIM,), jnp.float32)
    return w1, b1, w2, b2, gamma, beta


def reference(x, w1, b1, w2, b2, gamma, beta):
    """Pure-JAX (unfused) reference of the same forward pass."""
    h = x @ w1 + b1
    z = h @ w2 + b2
    mean = jnp.mean(z, axis=0, keepdims=True)
    var = jnp.mean((z - mean) ** 2, axis=0, keepdims=True)
    xhat = (z - mean) / jnp.sqrt(var + BN_EPS)
    y = gamma * xhat + beta
    return jax.nn.sigmoid(y)


if __name__ == "__main__":
    key = jax.random.PRNGKey(0)
    k_x, k_p = jax.random.split(key)
    params = init_params(k_p)

    # Small batch: exercises the fully fused single-kernel path.
    B = 8
    x = jax.random.normal(k_x, (B, IN_DIM), jnp.float32)
    out = jax.block_until_ready(sema_conf_net(x, *params))
    ref = reference(x, *params)
    assert out.shape == (B, OUT_DIM), out.shape
    assert jnp.allclose(out, ref, atol=5e-5, rtol=1e-4), (out, ref)

    # Slightly larger batch with small tile overrides: exercises the batch-tiled
    # grid path (ragged last tile, even tile count) and the finalize kernel.
    B2 = 200
    x2 = jax.random.normal(jax.random.PRNGKey(1), (B2, IN_DIM), jnp.float32)
    out2 = jax.block_until_ready(
        sema_conf_net(x2, *params, block_b=128, fused_max_batch=64))
    ref2 = reference(x2, *params)
    assert out2.shape == (B2, OUT_DIM), out2.shape
    assert jnp.allclose(out2, ref2, atol=5e-5, rtol=1e-4), (out2, ref2)

    print("KERNEL_OK")
</pallas_src>

<mosaic_0001>
module attributes {stable_mosaic.version = 11 : i64} {
  func.func @_fused_kernel(%arg0: memref<8x2048xf32, #tpu.memory_space<vmem>>, %arg1: memref<2048x8xf32, #tpu.memory_space<vmem>>, %arg2: memref<3xf32, #tpu.memory_space<smem>>, %arg3: memref<8x8xf32, #tpu.memory_space<vmem>>) attributes {dimension_semantics = [], scalar_prefetch = 0 : i64, scratch_operands = 0 : i64, tpu.core_type = #tpu.core_type<tc>} {
    %c0 = arith.constant 0 : index
    %c0_0 = arith.constant 0 : index
    %0 = vector.load %arg0[%c0, %c0_0] : memref<8x2048xf32, #tpu.memory_space<vmem>>, vector<8x2048xf32>
    %c0_1 = arith.constant 0 : index
    %c0_2 = arith.constant 0 : index
    %1 = vector.load %arg1[%c0_1, %c0_2] : memref<2048x8xf32, #tpu.memory_space<vmem>>, vector<2048x8xf32>
    %cst = arith.constant dense<0.000000e+00> : vector<8x8xf32>
    %2 = tpu.matmul %0, %1, %cst {dimension_numbers = #tpu.dot_dimension_numbers<[1], [0], [0], [1], [0, 0, 1, 1], [], []>} : vector<8x2048xf32>, vector<2048x8xf32>, vector<8x8xf32> -> vector<8x8xf32>
    %c0_3 = arith.constant 0 : index
    %3 = memref.load %arg2[%c0_3] : memref<3xf32, #tpu.memory_space<smem>>
    %4 = vector.broadcast %3 : f32 to vector<8x8xf32>
    %5 = arith.addf %2, %4 : vector<8x8xf32>
    %cst_4 = arith.constant dense<0.000000e+00> : vector<8xf32>
    %6 = vector.multi_reduction <add>, %5, %cst_4 [0] : vector<8x8xf32> to vector<8xf32>
    %7 = vector.shape_cast %6 : vector<8xf32> to vector<1x8xf32>
    %cst_5 = arith.constant 8.000000e+00 : f32
    %8 = vector.broadcast %cst_5 : f32 to vector<1x8xf32>
    %9 = arith.divf %7, %8 : vector<1x8xf32>
    %10 = vector.broadcast %9 : vector<1x8xf32> to vector<8x8xf32>
    %11 = arith.subf %5, %10 : vector<8x8xf32>
    %12 = arith.mulf %11, %11 : vector<8x8xf32>
    %cst_6 = arith.constant dense<0.000000e+00> : vector<8xf32>
    %13 = vector.multi_reduction <add>, %12, %cst_6 [0] : vector<8x8xf32> to vector<8xf32>
    %14 = vector.shape_cast %13 : vector<8xf32> to vector<1x8xf32>
    %cst_7 = arith.constant 8.000000e+00 : f32
    %15 = vector.broadcast %cst_7 : f32 to vector<1x8xf32>
    %16 = arith.divf %14, %15 : vector<1x8xf32>
    %c1 = arith.constant 1 : index
    %17 = memref.load %arg2[%c1] : memref<3xf32, #tpu.memory_space<smem>>
    %cst_8 = arith.constant 9.99999974E-6 : f32
    %18 = vector.broadcast %cst_8 : f32 to vector<1x8xf32>
    %19 = arith.addf %16, %18 : vector<1x8xf32>
    %20 = math.rsqrt %19 : vector<1x8xf32>
    %21 = vector.broadcast %20 : vector<1x8xf32> to vector<8x8xf32>
    %22 = arith.mulf %11, %21 : vector<8x8xf32>
    %23 = vector.broadcast %17 : f32 to vector<8x8xf32>
    %24 = arith.mulf %23, %22 : vector<8x8xf32>
    %c2 = arith.constant 2 : index
    %25 = memref.load %arg2[%c2] : memref<3xf32, #tpu.memory_space<smem>>
    %26 = vector.broadcast %25 : f32 to vector<8x8xf32>
    %27 = arith.addf %24, %26 : vector<8x8xf32>
    %cst_9 = arith.constant 0.000000e+00 : f32
    %28 = vector.broadcast %cst_9 : f32 to vector<8x8xf32>
    %29 = arith.subf %28, %27 : vector<8x8xf32>
    %30 = math.exp %29 : vector<8x8xf32>
    %cst_10 = arith.constant 1.000000e+00 : f32
    %31 = vector.broadcast %cst_10 : f32 to vector<8x8xf32>
    %32 = arith.addf %31, %30 : vector<8x8xf32>
    %cst_11 = arith.constant 1.000000e+00 : f32
    %33 = vector.broadcast %cst_11 : f32 to vector<8x8xf32>
    %34 = arith.divf %33, %32 : vector<8x8xf32>
    %c0_12 = arith.constant 0 : index
    %c0_13 = arith.constant 0 : index
    %35 = vector.load %arg3[%c0_12, %c0_13] : memref<8x8xf32, #tpu.memory_space<vmem>>, vector<8x8xf32>
    tpu.vector_store %arg3[%c0_12, %c0_13], %34 {strides = array<i32>} : memref<8x8xf32, #tpu.memory_space<vmem>>, vector<8x8xf32>,
    return
  }
}

</mosaic_0001>

<bundles_post_ra>
// kernel: tpu_custom_call.1
= control target key start
LH: loop header
LB: loop body
LE: loop exit
PB: predicated region body
PF: predicated region fallthrough
CT: control target
= control target key end

     0   :  { %8 = vsyncpa [#allocation4], 0  ;;  %s2086_s0 = inlined_call_operand.vmem [shape: f32[8,2048], index: 0, kind: input, shape index: {}]   ;;  %s2087_s1 = inlined_call_operand.vmem [shape: f32[2048,8], index: 1, kind: input, shape index: {}]   ;;  %s2088_s2 = inlined_call_operand.vmem [shape: f32[3], index: 2, kind: input, shape index: {}]   ;;  %s2089_s3 = inlined_call_operand.hbm [shape: f32[8,8], index: 3, kind: output, shape index: {}]  }
   0x1   :  { %9 = vsyncpa [#allocation3], 0  ;;  %s20_s14 = sshll.u32 %s2088_s2, 4  ;;  %s21_s14 = int_to_ptr.vmem [resolvable:$true] %s20_s14 }
   0x2   :  { %s1203_s15 = scalar_lea.vmem %s21_s14, 16  ;;  %p1208_p1 = scmp.lt.s32.totalorder %s21_s14, %s21_s14 }
   0x3   :  { %p1204_p0 = scmp.ne.s32.totalorder %s21_s14, %s1203_s15  ;;  %p1209_p2 = scmp.lt.s32.totalorder %s1203_s15, %s1203_s15 }
   0x5   :  { %p1210_p3 = por %p1209_p2, %p1208_p1 }
   0x7   :  { %p1211_p4 = pnand %p1210_p3, %p1204_p0 }
   0x9   :  { %1214 = shalt.err (!%p1211_p4)
}
   0xa   :  { %s1239_s16 = smov [#allocation2]  }
   0xb   :  { %23 = dma.vmem_to_smem %s21_s14, 16, %s1239_s16, [#allocation4]  }
   0xc   :  { %1235 = dma.done.wait [#allocation4], 16  }
   0xd   :  { %1236 = vsyncadd [#allocation4], 4294967280 }
   0xe   :  { %27 = sfence }
   0xf   :  { %v75_v0 = vld [vmem:[%s2087_s1 + $0xf8] sm:$0xff]  ;;  %v74_v4 = vld [vmem:[%s2087_s1 + $0xf0] sm:$0xff]  ;;  %v73_v8 = vld [vmem:[%s2087_s1 + $0xe8] sm:$0xff]  ;;  %vm862_vm0 = vcmask 64512   ;;  %s914_s28 = sld [smem:[#allocation2 + $0x2]]  ;;  %s1240_s29 = smov [#allocation5]  }
  0x10   :  { %v107_v1 = vld [vmem:[%s2087_s1 + $0x1f8] sm:$0xff]  ;;  %915 = vmatprep.subr.mxu0 %v75_v0  ;;  %v106_v5 = vld [vmem:[%s2087_s1 + $0x1f0] sm:$0xff]  ;;  %v105_v9 = vld [vmem:[%s2087_s1 + $0x1e8] sm:$0xff]  ;;  %s904_s30 = sshll.u32 %s1240_s29, 4  ;;  %s905_s30 = int_to_ptr.vmem [resolvable:$true] %s904_s30 }
  0x11   :  { %v59_v2 = vld [vmem:[%s2087_s1 + $0x78] sm:$0xff]  ;;  %950 = vmatprep.subr.mxu1 %v107_v1  ;;  %v58_v6 = vld [vmem:[%s2087_s1 + $0x70] sm:$0xff]  ;;  %v57_v10 = vld [vmem:[%s2087_s1 + $0x68] sm:$0xff]  ;;  %s1215_s4 = scalar_lea.vmem %s905_s30, 128  ;;  %p1220_p6 = scmp.lt.s32.totalorder %s905_s30, %s905_s30 }
  0x12   :  { %v91_v3 = vld [vmem:[%s2087_s1 + $0x178] sm:$0xff]  ;;  %916 = vmatpush3.msra.mxu0 %v59_v2  ;;  %v90_v7 = vld [vmem:[%s2087_s1 + $0x170] sm:$0xff]  ;;  %v89_v11 = vld [vmem:[%s2087_s1 + $0x168] sm:$0xff]  ;;  %p1216_p5 = scmp.ne.s32.totalorder %s905_s30, %s1215_s4  ;;  %p1221_p7 = scmp.lt.s32.totalorder %s1215_s4, %s1215_s4 }
  0x13   :  { %951 = vmatpush3.msra.mxu1 %v91_v3  ;;  %917 = vmatprep.subr.mxu0 %v74_v4  ;;  %v72_v12 = vld [vmem:[%s2087_s1 + $0xe0] sm:$0xff]  ;;  %v71_v16 = vld [vmem:[%s2087_s1 + $0xd8] sm:$0xff]  ;;  %v70_v20 = vld [vmem:[%s2087_s1 + $0xd0] sm:$0xff] }
  0x14   :  { %952 = vmatprep.subr.mxu1 %v106_v5  ;;  %918 = vmatpush3.msra.mxu0 %v58_v6  ;;  %v104_v13 = vld [vmem:[%s2087_s1 + $0x1e0] sm:$0xff]  ;;  %v103_v17 = vld [vmem:[%s2087_s1 + $0x1d8] sm:$0xff]  ;;  %v102_v21 = vld [vmem:[%s2087_s1 + $0x1d0] sm:$0xff]  ;;  %p1222_p8 = por %p1221_p7, %p1220_p6 }
  0x15   :  { %953 = vmatpush3.msra.mxu1 %v90_v7  ;;  %919 = vmatprep.subr.mxu0 %v73_v8  ;;  %v56_v14 = vld [vmem:[%s2087_s1 + $0x60] sm:$0xff]  ;;  %v55_v18 = vld [vmem:[%s2087_s1 + $0x58] sm:$0xff]  ;;  %v54_v22 = vld [vmem:[%s2087_s1 + $0x50] sm:$0xff] }
  0x16   :  { %954 = vmatprep.subr.mxu1 %v105_v9  ;;  %v88_v15 = vld [vmem:[%s2087_s1 + $0x160] sm:$0xff]  ;;  %920 = vmatpush3.msra.mxu0 %v57_v10  ;;  %v87_v19 = vld [vmem:[%s2087_s1 + $0x158] sm:$0xff]  ;;  %v86_v23 = vld [vmem:[%s2087_s1 + $0x150] sm:$0xff]  ;;  %p1223_p9 = pnand %p1222_p8, %p1216_p5 }
  0x17   :  { %955 = vmatpush3.msra.mxu1 %v89_v11  ;;  %921 = vmatprep.subr.mxu0 %v72_v12  ;;  %v69_v24 = vld [vmem:[%s2087_s1 + $0xc8] sm:$0xff]  ;;  %v68_v28 = vld [vmem:[%s2087_s1 + $0xc0] sm:$0xff]  ;;  %v67_v32 = vld [vmem:[%s2087_s1 + $0xb8] sm:$0xff] }
  0x18   :  { %956 = vmatprep.subr.mxu1 %v104_v13  ;;  %922 = vmatpush3.msra.mxu0 %v56_v14  ;;  %v101_v25 = vld [vmem:[%s2087_s1 + $0x1c8] sm:$0xff]  ;;  %v100_v29 = vld [vmem:[%s2087_s1 + $0x1c0] sm:$0xff]  ;;  %v99_v33 = vld [vmem:[%s2087_s1 + $0x1b8] sm:$0xff] }
  0x19   :  { %957 = vmatpush3.msra.mxu1 %v88_v15  ;;  %923 = vmatprep.subr.mxu0 %v71_v16  ;;  %v53_v26 = vld [vmem:[%s2087_s1 + $0x48] sm:$0xff]  ;;  %v52_v30 = vld [vmem:[%s2087_s1 + $0x40] sm:$0xff]  ;;  %v51_v34 = vld [vmem:[%s2087_s1 + $0x38] sm:$0xff] }
  0x1a   :  { %958 = vmatprep.subr.mxu1 %v103_v17  ;;  %924 = vmatpush3.msra.mxu0 %v55_v18  ;;  %v85_v27 = vld [vmem:[%s2087_s1 + $0x148] sm:$0xff]  ;;  %v84_v31 = vld [vmem:[%s2087_s1 + $0x140] sm:$0xff]  ;;  %v83_v35 = vld [vmem:[%s2087_s1 + $0x138] sm:$0xff] }
  0x1b   :  { %959 = vmatpush3.msra.mxu1 %v87_v19  ;;  %925 = vmatprep.subr.mxu0 %v70_v20  ;;  %v66_v36 = vld [vmem:[%s2087_s1 + $0xb0] sm:$0xff]  ;;  %v65_v40 = vld [vmem:[%s2087_s1 + $0xa8] sm:$0xff]  ;;  %v64_v44 = vld [vmem:[%s2087_s1 + $0xa0] sm:$0xff] }
  0x1c   :  { %960 = vmatprep.subr.mxu1 %v102_v21  ;;  %926 = vmatpush3.msra.mxu0 %v54_v22  ;;  %v98_v37 = vld [vmem:[%s2087_s1 + $0x1b0] sm:$0xff]  ;;  %v97_v41 = vld [vmem:[%s2087_s1 + $0x1a8] sm:$0xff]  ;;  %v96_v45 = vld [vmem:[%s2087_s1 + $0x1a0] sm:$0xff] }
  0x1d   :  { %961 = vmatpush3.msra.mxu1 %v86_v23  ;;  %927 = vmatprep.subr.mxu0 %v69_v24  ;;  %v50_v38 = vld [vmem:[%s2087_s1 + $0x30] sm:$0xff]  ;;  %v49_v42 = vld [vmem:[%s2087_s1 + $0x28] sm:$0xff]  ;;  %v48_v46 = vld [vmem:[%s2087_s1 + $0x20] sm:$0xff] }
  0x1e   :  { %962 = vmatprep.subr.mxu1 %v101_v25  ;;  %928 = vmatpush3.msra.mxu0 %v53_v26  ;;  %v82_v39 = vld [vmem:[%s2087_s1 + $0x130] sm:$0xff]  ;;  %v81_v43 = vld [vmem:[%s2087_s1 + $0x128] sm:$0xff]  ;;  %v80_v47 = vld [vmem:[%s2087_s1 + $0x120] sm:$0xff] }
  0x1f   :  { %963 = vmatpush3.msra.mxu1 %v85_v27  ;;  %929 = vmatprep.subr.mxu0 %v68_v28  ;;  %v63_v48 = vld [vmem:[%s2087_s1 + $0x98] sm:$0xff]  ;;  %v62_v52 = vld [vmem:[%s2087_s1 + $0x90] sm:$0xff]  ;;  %v61_v56 = vld [vmem:[%s2087_s1 + $0x88] sm:$0xff] }
  0x20   :  { %964 = vmatprep.subr.mxu1 %v100_v29  ;;  %930 = vmatpush3.msra.mxu0 %v52_v30  ;;  %v95_v49 = vld [vmem:[%s2087_s1 + $0x198] sm:$0xff]  ;;  %v94_v53 = vld [vmem:[%s2087_s1 + $0x190] sm:$0xff]  ;;  %v93_v57 = vld [vmem:[%s2087_s1 + $0x188] sm:$0xff] }
  0x21   :  { %965 = vmatpush3.msra.mxu1 %v84_v31  ;;  %931 = vmatprep.subr.mxu0 %v67_v32  ;;  %v47_v50 = vld [vmem:[%s2087_s1 + $0x18] sm:$0xff]  ;;  %v46_v54 = vld [vmem:[%s2087_s1 + $0x10] sm:$0xff]  ;;  %v45_v58 = vld [vmem:[%s2087_s1 + $0x8] sm:$0xff] }
  0x22   :  { %966 = vmatprep.subr.mxu1 %v99_v33  ;;  %932 = vmatpush3.msra.mxu0 %v51_v34  ;;  %v79_v51 = vld [vmem:[%s2087_s1 + $0x118] sm:$0xff]  ;;  %v78_v55 = vld [vmem:[%s2087_s1 + $0x110] sm:$0xff]  ;;  %v77_v59 = vld [vmem:[%s2087_s1 + $0x108] sm:$0xff] }
  0x23   :  { %967 = vmatpush3.msra.mxu1 %v83_v35  ;;  %933 = vmatprep.subr.mxu0 %v66_v36  ;;  %v60_v60 = vld [vmem:[%s2087_s1 + $0x80] sm:$0xff]  ;;  %v29_v63 = vld [vmem:[%s2086_s0 + $0x8] sm:$0xff]  ;;  %v31_v2 = vld [vmem:[%s2086_s0 + $0x18] sm:$0xff] }
  0x24   :  { %968 = vmatprep.subr.mxu1 %v98_v37  ;;  %934 = vmatpush3.msra.mxu0 %v50_v38  ;;  %v92_v61 = vld [vmem:[%s2087_s1 + $0x180] sm:$0xff]  ;;  %v139_v3 = vld [vmem:[%s2087_s1 + $0x2f8] sm:$0xff]  ;;  %v30_v5 = vld [vmem:[%s2086_s0 + $0x10] sm:$0xff] }
  0x25   :  { %969 = vmatpush3.msra.mxu1 %v82_v39  ;;  %935 = vmatprep.subr.mxu0 %v65_v40  ;;  %v44_v62 = vld [vmem:[%s2087_s1] sm:$0xff]  ;;  %v171_v4 = vld [vmem:[%s2087_s1 + $0x3f8] sm:$0xff]  ;;  %v138_v8 = vld [vmem:[%s2087_s1 + $0x2f0] sm:$0xff] }
  0x26   :  { %970 = vmatprep.subr.mxu1 %v97_v41  ;;  %936 = vmatpush3.msra.mxu0 %v49_v42  ;;  %v76_v0 = vld [vmem:[%s2087_s1 + $0x100] sm:$0xff]  ;;  %v123_v6 = vld [vmem:[%s2087_s1 + $0x278] sm:$0xff]  ;;  %v170_v9 = vld [vmem:[%s2087_s1 + $0x3f0] sm:$0xff] }
  0x27   :  { %971 = vmatpush3.msra.mxu1 %v81_v43  ;;  %937 = vmatprep.subr.mxu0 %v64_v44  ;;  %v28_v1 = vld [vmem:[%s2086_s0] sm:$0xff]  ;;  %v155_v7 = vld [vmem:[%s2087_s1 + $0x378] sm:$0xff]  ;;  %v122_v10 = vld [vmem:[%s2087_s1 + $0x270] sm:$0xff] }
  0x28   :  { %972 = vmatprep.subr.mxu1 %v96_v45  ;;  %938 = vmatpush3.msra.mxu0 %v48_v46  ;;  %v154_v11 = vld [vmem:[%s2087_s1 + $0x370] sm:$0xff]  ;;  %v137_v12 = vld [vmem:[%s2087_s1 + $0x2e8] sm:$0xff]  ;;  %v136_v16 = vld [vmem:[%s2087_s1 + $0x2e0] sm:$0xff] }
  0x29   :  { %973 = vmatpush3.msra.mxu1 %v80_v47  ;;  %939 = vmatprep.subr.mxu0 %v63_v48  ;;  %v169_v13 = vld [vmem:[%s2087_s1 + $0x3e8] sm:$0xff]  ;;  %v168_v17 = vld [vmem:[%s2087_s1 + $0x3e0] sm:$0xff]  ;;  %v135_v20 = vld [vmem:[%s2087_s1 + $0x2d8] sm:$0xff] }
  0x2a   :  { %974 = vmatprep.subr.mxu1 %v95_v49  ;;  %940 = vmatpush3.msra.mxu0 %v47_v50  ;;  %v121_v14 = vld [vmem:[%s2087_s1 + $0x268] sm:$0xff]  ;;  %v120_v18 = vld [vmem:[%s2087_s1 + $0x260] sm:$0xff]  ;;  %v167_v21 = vld [vmem:[%s2087_s1 + $0x3d8] sm:$0xff] }
  0x2b   :  { %975 = vmatpush3.msra.mxu1 %v79_v51  ;;  %941 = vmatprep.subr.mxu0 %v62_v52  ;;  %v153_v15 = vld [vmem:[%s2087_s1 + $0x368] sm:$0xff]  ;;  %v152_v19 = vld [vmem:[%s2087_s1 + $0x360] sm:$0xff]  ;;  %v119_v22 = vld [vmem:[%s2087_s1 + $0x258] sm:$0xff] }
  0x2c   :  { %976 = vmatprep.subr.mxu1 %v94_v53  ;;  %942 = vmatpush3.msra.mxu0 %v46_v54  ;;  %v151_v23 = vld [vmem:[%s2087_s1 + $0x358] sm:$0xff]  ;;  %v134_v24 = vld [vmem:[%s2087_s1 + $0x2d0] sm:$0xff]  ;;  %v133_v28 = vld [vmem:[%s2087_s1 + $0x2c8] sm:$0xff] }
  0x2d   :  { %977 = vmatpush3.msra.mxu1 %v78_v55  ;;  %943 = vmatprep.subr.mxu0 %v61_v56  ;;  %v166_v25 = vld [vmem:[%s2087_s1 + $0x3d0] sm:$0xff]  ;;  %v165_v29 = vld [vmem:[%s2087_s1 + $0x3c8] sm:$0xff]  ;;  %v132_v32 = vld [vmem:[%s2087_s1 + $0x2c0] sm:$0xff] }
  0x2e   :  { %978 = vmatprep.subr.mxu1 %v93_v57  ;;  %944 = vmatpush3.msra.mxu0 %v45_v58  ;;  %v118_v26 = vld [vmem:[%s2087_s1 + $0x250] sm:$0xff]  ;;  %v117_v30 = vld [vmem:[%s2087_s1 + $0x248] sm:$0xff]  ;;  %v164_v33 = vld [vmem:[%s2087_s1 + $0x3c0] sm:$0xff] }
  0x2f   :  { %979 = vmatpush3.msra.mxu1 %v77_v59  ;;  %945 = vmatprep.subr.mxu0 %v60_v60  ;;  %v150_v27 = vld [vmem:[%s2087_s1 + $0x350] sm:$0xff]  ;;  %v149_v31 = vld [vmem:[%s2087_s1 + $0x348] sm:$0xff]  ;;  %v116_v34 = vld [vmem:[%s2087_s1 + $0x240] sm:$0xff] }
  0x30   :  { %980 = vmatprep.subr.mxu1 %v92_v61  ;;  %946 = vmatpush3.msra.mxu0 %v44_v62  ;;  %v148_v35 = vld [vmem:[%s2087_s1 + $0x340] sm:$0xff]  ;;  %v131_v36 = vld [vmem:[%s2087_s1 + $0x2b8] sm:$0xff]  ;;  %v130_v40 = vld [vmem:[%s2087_s1 + $0x2b0] sm:$0xff] }
  0x31   :  { %366 = vmatprep.mubr.f32.mxu0 %v29_v63  ;;  %981 = vmatpush3.msra.mxu1 %v76_v0  ;;  %v163_v37 = vld [vmem:[%s2087_s1 + $0x3b8] sm:$0xff]  ;;  %v162_v41 = vld [vmem:[%s2087_s1 + $0x3b0] sm:$0xff]  ;;  %v129_v44 = vld [vmem:[%s2087_s1 + $0x2a8] sm:$0xff] }
  0x32   :  { %367 = vmatmul.mubr.f32.vlgmr.msra.gmra.mxu0 %v28_v1  ;;  %436 = vmatprep.mubr.f32.mxu1 %v31_v2  ;;  %v115_v38 = vld [vmem:[%s2087_s1 + $0x238] sm:$0xff]  ;;  %v114_v42 = vld [vmem:[%s2087_s1 + $0x230] sm:$0xff]  ;;  %v161_v45 = vld [vmem:[%s2087_s1 + $0x3a8] sm:$0xff] }
  0x33   :  { %985 = vmatprep.subr.mxu0 %v139_v3  ;;  %1020 = vmatprep.subr.mxu1 %v171_v4  ;;  %v147_v39 = vld [vmem:[%s2087_s1 + $0x338] sm:$0xff]  ;;  %v146_v43 = vld [vmem:[%s2087_s1 + $0x330] sm:$0xff]  ;;  %v113_v46 = vld [vmem:[%s2087_s1 + $0x228] sm:$0xff] }
  0x34   :  { %437 = vmatmul.mubr.f32.vlgmr.msra.gmra.mxu1 %v30_v5  ;;  %986 = vmatpush3.msra.mxu0 %v123_v6  ;;  %v145_v47 = vld [vmem:[%s2087_s1 + $0x328] sm:$0xff]  ;;  %v128_v48 = vld [vmem:[%s2087_s1 + $0x2a0] sm:$0xff]  ;;  %v127_v52 = vld [vmem:[%s2087_s1 + $0x298] sm:$0xff] }
  0x35   :  { %1021 = vmatpush3.msra.mxu1 %v155_v7  ;;  %987 = vmatprep.subr.mxu0 %v138_v8  ;;  %v160_v49 = vld [vmem:[%s2087_s1 + $0x3a0] sm:$0xff]  ;;  %v159_v53 = vld [vmem:[%s2087_s1 + $0x398] sm:$0xff]  ;;  %v126_v56 = vld [vmem:[%s2087_s1 + $0x290] sm:$0xff] }
  0x36   :  { %1022 = vmatprep.subr.mxu1 %v170_v9  ;;  %988 = vmatpush3.msra.mxu0 %v122_v10  ;;  %v112_v50 = vld [vmem:[%s2087_s1 + $0x220] sm:$0xff]  ;;  %v111_v54 = vld [vmem:[%s2087_s1 + $0x218] sm:$0xff]  ;;  %v158_v57 = vld [vmem:[%s2087_s1 + $0x390] sm:$0xff] }
  0x37   :  { %1023 = vmatpush3.msra.mxu1 %v154_v11  ;;  %989 = vmatprep.subr.mxu0 %v137_v12  ;;  %v144_v51 = vld [vmem:[%s2087_s1 + $0x320] sm:$0xff]  ;;  %v143_v55 = vld [vmem:[%s2087_s1 + $0x318] sm:$0xff]  ;;  %v110_v58 = vld [vmem:[%s2087_s1 + $0x210] sm:$0xff] }
  0x38   :  { %1024 = vmatprep.subr.mxu1 %v169_v13  ;;  %990 = vmatpush3.msra.mxu0 %v121_v14  ;;  %v142_v59 = vld [vmem:[%s2087_s1 + $0x310] sm:$0xff]  ;;  %v125_v60 = vld [vmem:[%s2087_s1 + $0x288] sm:$0xff]  ;;  %v124_v0 = vld [vmem:[%s2087_s1 + $0x280] sm:$0xff] }
  0x39   :  { %1025 = vmatpush3.msra.mxu1 %v153_v15  ;;  %991 = vmatprep.subr.mxu0 %v136_v16  ;;  %v157_v61 = vld [vmem:[%s2087_s1 + $0x388] sm:$0xff]  ;;  %v156_v1 = vld [vmem:[%s2087_s1 + $0x380] sm:$0xff]  ;;  %v35_v6 = vld [vmem:[%s2086_s0 + $0x38] sm:$0xff] }
  0x3a   :  { %1026 = vmatprep.subr.mxu1 %v168_v17  ;;  %992 = vmatpush3.msra.mxu0 %v120_v18  ;;  %v109_v62 = vld [vmem:[%s2087_s1 + $0x208] sm:$0xff]  ;;  %v108_v2 = vld [vmem:[%s2087_s1 + $0x200] sm:$0xff]  ;;  %v203_v7 = vld [vmem:[%s2087_s1 + $0x4f8] sm:$0xff] }
  0x3b   :  { %1027 = vmatpush3.msra.mxu1 %v152_v19  ;;  %993 = vmatprep.subr.mxu0 %v135_v20  ;;  %v141_v63 = vld [vmem:[%s2087_s1 + $0x308] sm:$0xff]  ;;  %v140_v4 = vld [vmem:[%s2087_s1 + $0x300] sm:$0xff]  ;;  %v235_v8 = vld [vmem:[%s2087_s1 + $0x5f8] sm:$0xff] }
  0x3c   :  { %1028 = vmatprep.subr.mxu1 %v167_v21  ;;  %994 = vmatpush3.msra.mxu0 %v119_v22  ;;  %v33_v3 = vld [vmem:[%s2086_s0 + $0x28] sm:$0xff]  ;;  %v32_v5 = vld [vmem:[%s2086_s0 + $0x20] sm:$0xff]  ;;  %v34_v9 = vld [vmem:[%s2086_s0 + $0x30] sm:$0xff] }
  0x3d   :  { %1029 = vmatpush3.msra.mxu1 %v151_v23  ;;  %995 = vmatprep.subr.mxu0 %v134_v24  ;;  %v187_v10 = vld [vmem:[%s2087_s1 + $0x478] sm:$0xff]  ;;  %v202_v12 = vld [vmem:[%s2087_s1 + $0x4f0] sm:$0xff]  ;;  %v201_v16 = vld [vmem:[%s2087_s1 + $0x4e8] sm:$0xff] }
  0x3e   :  { %1030 = vmatprep.subr.mxu1 %v166_v25  ;;  %996 = vmatpush3.msra.mxu0 %v118_v26  ;;  %v219_v11 = vld [vmem:[%s2087_s1 + $0x578] sm:$0xff]  ;;  %v234_v13 = vld [vmem:[%s2087_s1 + $0x5f0] sm:$0xff]  ;;  %v233_v17 = vld [vmem:[%s2087_s1 + $0x5e8] sm:$0xff] }
  0x3f   :  { %1031 = vmatpush3.msra.mxu1 %v150_v27  ;;  %997 = vmatprep.subr.mxu0 %v133_v28  ;;  %v186_v14 = vld [vmem:[%s2087_s1 + $0x470] sm:$0xff]  ;;  %v185_v18 = vld [vmem:[%s2087_s1 + $0x468] sm:$0xff]  ;;  %v200_v20 = vld [vmem:[%s2087_s1 + $0x4e0] sm:$0xff] }
  0x40   :  { %1032 = vmatprep.subr.mxu1 %v165_v29  ;;  %998 = vmatpush3.msra.mxu0 %v117_v30  ;;  %v218_v15 = vld [vmem:[%s2087_s1 + $0x570] sm:$0xff]  ;;  %v217_v19 = vld [vmem:[%s2087_s1 + $0x568] sm:$0xff]  ;;  %v232_v21 = vld [vmem:[%s2087_s1 + $0x5e0] sm:$0xff] }
  0x41   :  { %1033 = vmatpush3.msra.mxu1 %v149_v31  ;;  %999 = vmatprep.subr.mxu0 %v132_v32  ;;  %v184_v22 = vld [vmem:[%s2087_s1 + $0x460] sm:$0xff]  ;;  %v199_v24 = vld [vmem:[%s2087_s1 + $0x4d8] sm:$0xff]  ;;  %v198_v28 = vld [vmem:[%s2087_s1 + $0x4d0] sm:$0xff] }
  0x42   :  { %1034 = vmatprep.subr.mxu1 %v164_v33  ;;  %1000 = vmatpush3.msra.mxu0 %v116_v34  ;;  %v216_v23 = vld [vmem:[%s2087_s1 + $0x560] sm:$0xff]  ;;  %v231_v25 = vld [vmem:[%s2087_s1 + $0x5d8] sm:$0xff]  ;;  %v230_v29 = vld [vmem:[%s2087_s1 + $0x5d0] sm:$0xff] }
  0x43   :  { %1035 = vmatpush3.msra.mxu1 %v148_v35  ;;  %1001 = vmatprep.subr.mxu0 %v131_v36  ;;  %v183_v26 = vld [vmem:[%s2087_s1 + $0x458] sm:$0xff]  ;;  %v182_v30 = vld [vmem:[%s2087_s1 + $0x450] sm:$0xff]  ;;  %v197_v32 = vld [vmem:[%s2087_s1 + $0x4c8] sm:$0xff] }
  0x44   :  { %1036 = vmatprep.subr.mxu1 %v163_v37  ;;  %1002 = vmatpush3.msra.mxu0 %v115_v38  ;;  %v215_v27 = vld [vmem:[%s2087_s1 + $0x558] sm:$0xff]  ;;  %v214_v31 = vld [vmem:[%s2087_s1 + $0x550] sm:$0xff]  ;;  %v229_v33 = vld [vmem:[%s2087_s1 + $0x5c8] sm:$0xff] }
  0x45   :  { %1037 = vmatpush3.msra.mxu1 %v147_v39  ;;  %1003 = vmatprep.subr.mxu0 %v130_v40  ;;  %v181_v34 = vld [vmem:[%s2087_s1 + $0x448] sm:$0xff]  ;;  %v196_v36 = vld [vmem:[%s2087_s1 + $0x4c0] sm:$0xff]  ;;  %v195_v40 = vld [vmem:[%s2087_s1 + $0x4b8] sm:$0xff] }
  0x46   :  { %1038 = vmatprep.subr.mxu1 %v162_v41  ;;  %1004 = vmatpush3.msra.mxu0 %v114_v42  ;;  %v213_v35 = vld [vmem:[%s2087_s1 + $0x548] sm:$0xff]  ;;  %v228_v37 = vld [vmem:[%s2087_s1 + $0x5c0] sm:$0xff]  ;;  %v227_v41 = vld [vmem:[%s2087_s1 + $0x5b8] sm:$0xff] }
  0x47   :  { %1039 = vmatpush3.msra.mxu1 %v146_v43  ;;  %1005 = vmatprep.subr.mxu0 %v129_v44  ;;  %v180_v38 = vld [vmem:[%s2087_s1 + $0x440] sm:$0xff]  ;;  %v179_v42 = vld [vmem:[%s2087_s1 + $0x438] sm:$0xff]  ;;  %v194_v44 = vld [vmem:[%s2087_s1 + $0x4b0] sm:$0xff] }
  0x48   :  { %1040 = vmatprep.subr.mxu1 %v161_v45  ;;  %1006 = vmatpush3.msra.mxu0 %v113_v46  ;;  %v212_v39 = vld [vmem:[%s2087_s1 + $0x540] sm:$0xff]  ;;  %v211_v43 = vld [vmem:[%s2087_s1 + $0x538] sm:$0xff]  ;;  %v226_v45 = vld [vmem:[%s2087_s1 + $0x5b0] sm:$0xff] }
  0x49   :  { %1041 = vmatpush3.msra.mxu1 %v145_v47  ;;  %1007 = vmatprep.subr.mxu0 %v128_v48  ;;  %v178_v46 = vld [vmem:[%s2087_s1 + $0x430] sm:$0xff]  ;;  %v193_v48 = vld [vmem:[%s2087_s1 + $0x4a8] sm:$0xff] }
  0x4a   :  { %1042 = vmatprep.subr.mxu1 %v160_v49  ;;  %1008 = vmatpush3.msra.mxu0 %v112_v50  ;;  %v210_v47 = vld [vmem:[%s2087_s1 + $0x530] sm:$0xff]  ;;  %v225_v49 = vld [vmem:[%s2087_s1 + $0x5a8] sm:$0xff] }
  0x4b   :  { %1043 = vmatpush3.msra.mxu1 %v144_v51  ;;  %1009 = vmatprep.subr.mxu0 %v127_v52  ;;  %v177_v50 = vld [vmem:[%s2087_s1 + $0x428] sm:$0xff]  ;;  %v192_v52 = vld [vmem:[%s2087_s1 + $0x4a0] sm:$0xff] }
  0x4c   :  { %1044 = vmatprep.subr.mxu1 %v159_v53  ;;  %1010 = vmatpush3.msra.mxu0 %v111_v54  ;;  %v209_v51 = vld [vmem:[%s2087_s1 + $0x528] sm:$0xff]  ;;  %v224_v53 = vld [vmem:[%s2087_s1 + $0x5a0] sm:$0xff] }
  0x4d   :  { %1045 = vmatpush3.msra.mxu1 %v143_v55  ;;  %1011 = vmatprep.subr.mxu0 %v126_v56  ;;  %v176_v54 = vld [vmem:[%s2087_s1 + $0x420] sm:$0xff]  ;;  %v191_v56 = vld [vmem:[%s2087_s1 + $0x498] sm:$0xff] }
  0x4e   :  { %1046 = vmatprep.subr.mxu1 %v158_v57  ;;  %1012 = vmatpush3.msra.mxu0 %v110_v58  ;;  %v208_v55 = vld [vmem:[%s2087_s1 + $0x520] sm:$0xff]  ;;  %v223_v57 = vld [vmem:[%s2087_s1 + $0x598] sm:$0xff] }
  0x4f   :  { %1047 = vmatpush3.msra.mxu1 %v142_v59  ;;  %1013 = vmatprep.subr.mxu0 %v125_v60  ;;  %v175_v58 = vld [vmem:[%s2087_s1 + $0x418] sm:$0xff]  ;;  %v190_v60 = vld [vmem:[%s2087_s1 + $0x490] sm:$0xff] }
  0x50   :  { %1048 = vmatprep.subr.mxu1 %v157_v61  ;;  %1014 = vmatpush3.msra.mxu0 %v109_v62  ;;  %v207_v59 = vld [vmem:[%s2087_s1 + $0x518] sm:$0xff]  ;;  %v222_v61 = vld [vmem:[%s2087_s1 + $0x590] sm:$0xff] }
  0x51   :  { %1049 = vmatpush3.msra.mxu1 %v141_v63  ;;  %1015 = vmatprep.subr.mxu0 %v124_v0  ;;  %v174_v62 = vld [vmem:[%s2087_s1 + $0x410] sm:$0xff]  ;;  %v189_v0 = vld [vmem:[%s2087_s1 + $0x488] sm:$0xff] }
  0x52   :  { %1050 = vmatprep.subr.mxu1 %v156_v1  ;;  %1016 = vmatpush3.msra.mxu0 %v108_v2  ;;  %v206_v63 = vld [vmem:[%s2087_s1 + $0x510] sm:$0xff]  ;;  %v221_v1 = vld [vmem:[%s2087_s1 + $0x588] sm:$0xff] }
  0x53   :  { %506 = vmatprep.mubr.f32.mxu0 %v33_v3  ;;  %1051 = vmatpush3.msra.mxu1 %v140_v4  ;;  %v173_v2 = vld [vmem:[%s2087_s1 + $0x408] sm:$0xff]  ;;  %v188_v4 = vld [vmem:[%s2087_s1 + $0x480] sm:$0xff] }
  0x54   :  { %507 = vmatmul.mubr.f32.vlgmr.msra.gmra.mxu0 %v32_v5  ;;  %576 = vmatprep.mubr.f32.mxu1 %v35_v6  ;;  %v205_v3 = vld [vmem:[%s2087_s1 + $0x508] sm:$0xff]  ;;  %v220_v5 = vld [vmem:[%s2087_s1 + $0x580] sm:$0xff] }
  0x55   :  { %1055 = vmatprep.subr.mxu0 %v203_v7  ;;  %1090 = vmatprep.subr.mxu1 %v235_v8  ;;  %v172_v6 = vld [vmem:[%s2087_s1 + $0x400] sm:$0xff]  ;;  %v37_v7 = vld [vmem:[%s2086_s0 + $0x48] sm:$0xff] }
  0x56   :  { %577 = vmatmul.mubr.f32.vlgmr.msra.gmra.mxu1 %v34_v9  ;;  %1056 = vmatpush3.msra.mxu0 %v187_v10  ;;  %v204_v8 = vld [vmem:[%s2087_s1 + $0x500] sm:$0xff]  ;;  %v39_v10 = vld [vmem:[%s2086_s0 + $0x58] sm:$0xff] }
  0x57   :  { %1091 = vmatpush3.msra.mxu1 %v219_v11  ;;  %1057 = vmatprep.subr.mxu0 %v202_v12  ;;  %v36_v9 = vld [vmem:[%s2086_s0 + $0x40] sm:$0xff]  ;;  %v267_v11 = vld [vmem:[%s2087_s1 + $0x6f8] sm:$0xff] }
  0x58   :  { %1092 = vmatprep.subr.mxu1 %v234_v13  ;;  %1058 = vmatpush3.msra.mxu0 %v186_v14  ;;  %v299_v12 = vld [vmem:[%s2087_s1 + $0x7f8] sm:$0xff]  ;;  %v38_v13 = vld [vmem:[%s2086_s0 + $0x50] sm:$0xff] }
  0x59   :  { %1093 = vmatpush3.msra.mxu1 %v218_v15  ;;  %1059 = vmatprep.subr.mxu0 %v201_v16  ;;  %v251_v14 = vld [vmem:[%s2087_s1 + $0x678] sm:$0xff]  ;;  %v266_v16 = vld [vmem:[%s2087_s1 + $0x6f0] sm:$0xff] }
  0x5a   :  { %1094 = vmatprep.subr.mxu1 %v233_v17  ;;  %1060 = vmatpush3.msra.mxu0 %v185_v18  ;;  %v283_v15 = vld [vmem:[%s2087_s1 + $0x778] sm:$0xff]  ;;  %v298_v17 = vld [vmem:[%s2087_s1 + $0x7f0] sm:$0xff] }
  0x5b   :  { %1095 = vmatpush3.msra.mxu1 %v217_v19  ;;  %1061 = vmatprep.subr.mxu0 %v200_v20  ;;  %v250_v18 = vld [vmem:[%s2087_s1 + $0x670] sm:$0xff]  ;;  %v265_v20 = vld [vmem:[%s2087_s1 + $0x6e8] sm:$0xff] }
  0x5c   :  { %1096 = vmatprep.subr.mxu1 %v232_v21  ;;  %1062 = vmatpush3.msra.mxu0 %v184_v22  ;;  %v282_v19 = vld [vmem:[%s2087_s1 + $0x770] sm:$0xff]  ;;  %v297_v21 = vld [vmem:[%s2087_s1 + $0x7e8] sm:$0xff] }
  0x5d   :  { %1097 = vmatpush3.msra.mxu1 %v216_v23  ;;  %1063 = vmatprep.subr.mxu0 %v199_v24  ;;  %v249_v22 = vld [vmem:[%s2087_s1 + $0x668] sm:$0xff]  ;;  %v264_v24 = vld [vmem:[%s2087_s1 + $0x6e0] sm:$0xff] }
  0x5e   :  { %1098 = vmatprep.subr.mxu1 %v231_v25  ;;  %1064 = vmatpush3.msra.mxu0 %v183_v26  ;;  %v281_v23 = vld [vmem:[%s2087_s1 + $0x768] sm:$0xff]  ;;  %v296_v25 = vld [vmem:[%s2087_s1 + $0x7e0] sm:$0xff] }
  0x5f   :  { %1099 = vmatpush3.msra.mxu1 %v215_v27  ;;  %1065 = vmatprep.subr.mxu0 %v198_v28  ;;  %v248_v26 = vld [vmem:[%s2087_s1 + $0x660] sm:$0xff]  ;;  %v263_v28 = vld [vmem:[%s2087_s1 + $0x6d8] sm:$0xff] }
  0x60   :  { %1100 = vmatprep.subr.mxu1 %v230_v29  ;;  %1066 = vmatpush3.msra.mxu0 %v182_v30  ;;  %v280_v27 = vld [vmem:[%s2087_s1 + $0x760] sm:$0xff]  ;;  %v295_v29 = vld [vmem:[%s2087_s1 + $0x7d8] sm:$0xff] }
  0x61   :  { %1101 = vmatpush3.msra.mxu1 %v214_v31  ;;  %1067 = vmatprep.subr.mxu0 %v197_v32  ;;  %v247_v30 = vld [vmem:[%s2087_s1 + $0x658] sm:$0xff]  ;;  %v262_v32 = vld [vmem:[%s2087_s1 + $0x6d0] sm:$0xff] }
  0x62   :  { %1102 = vmatprep.subr.mxu1 %v229_v33  ;;  %1068 = vmatpush3.msra.mxu0 %v181_v34  ;;  %v279_v31 = vld [vmem:[%s2087_s1 + $0x758] sm:$0xff]  ;;  %v294_v33 = vld [vmem:[%s2087_s1 + $0x7d0] sm:$0xff] }
  0x63   :  { %1103 = vmatpush3.msra.mxu1 %v213_v35  ;;  %1069 = vmatprep.subr.mxu0 %v196_v36  ;;  %v246_v34 = vld [vmem:[%s2087_s1 + $0x650] sm:$0xff]  ;;  %v261_v36 = vld [vmem:[%s2087_s1 + $0x6c8] sm:$0xff] }
  0x64   :  { %1104 = vmatprep.subr.mxu1 %v228_v37  ;;  %1070 = vmatpush3.msra.mxu0 %v180_v38  ;;  %v278_v35 = vld [vmem:[%s2087_s1 + $0x750] sm:$0xff]  ;;  %v293_v37 = vld [vmem:[%s2087_s1 + $0x7c8] sm:$0xff] }
  0x65   :  { %1105 = vmatpush3.msra.mxu1 %v212_v39  ;;  %1071 = vmatprep.subr.mxu0 %v195_v40  ;;  %v245_v38 = vld [vmem:[%s2087_s1 + $0x648] sm:$0xff]  ;;  %v260_v40 = vld [vmem:[%s2087_s1 + $0x6c0] sm:$0xff] }
  0x66   :  { %1106 = vmatprep.subr.mxu1 %v227_v41  ;;  %1072 = vmatpush3.msra.mxu0 %v179_v42  ;;  %v277_v39 = vld [vmem:[%s2087_s1 + $0x748] sm:$0xff]  ;;  %v292_v41 = vld [vmem:[%s2087_s1 + $0x7c0] sm:$0xff] }
  0x67   :  { %1107 = vmatpush3.msra.mxu1 %v211_v43  ;;  %1073 = vmatprep.subr.mxu0 %v194_v44  ;;  %v244_v42 = vld [vmem:[%s2087_s1 + $0x640] sm:$0xff]  ;;  %v259_v44 = vld [vmem:[%s2087_s1 + $0x6b8] sm:$0xff] }
  0x68   :  { %1108 = vmatprep.subr.mxu1 %v226_v45  ;;  %1074 = vmatpush3.msra.mxu0 %v178_v46  ;;  %v276_v43 = vld [vmem:[%s2087_s1 + $0x740] sm:$0xff]  ;;  %v291_v45 = vld [vmem:[%s2087_s1 + $0x7b8] sm:$0xff] }
  0x69   :  { %1109 = vmatpush3.msra.mxu1 %v210_v47  ;;  %1075 = vmatprep.subr.mxu0 %v193_v48  ;;  %v243_v46 = vld [vmem:[%s2087_s1 + $0x638] sm:$0xff]  ;;  %v258_v48 = vld [vmem:[%s2087_s1 + $0x6b0] sm:$0xff] }
  0x6a   :  { %1110 = vmatprep.subr.mxu1 %v225_v49  ;;  %1076 = vmatpush3.msra.mxu0 %v177_v50  ;;  %v275_v47 = vld [vmem:[%s2087_s1 + $0x738] sm:$0xff]  ;;  %v290_v49 = vld [vmem:[%s2087_s1 + $0x7b0] sm:$0xff] }
  0x6b   :  { %1111 = vmatpush3.msra.mxu1 %v209_v51  ;;  %1077 = vmatprep.subr.mxu0 %v192_v52  ;;  %v242_v50 = vld [vmem:[%s2087_s1 + $0x630] sm:$0xff]  ;;  %v257_v52 = vld [vmem:[%s2087_s1 + $0x6a8] sm:$0xff] }
  0x6c   :  { %1112 = vmatprep.subr.mxu1 %v224_v53  ;;  %1078 = vmatpush3.msra.mxu0 %v176_v54  ;;  %v274_v51 = vld [vmem:[%s2087_s1 + $0x730] sm:$0xff]  ;;  %v289_v53 = vld [vmem:[%s2087_s1 + $0x7a8] sm:$0xff] }
  0x6d   :  { %1113 = vmatpush3.msra.mxu1 %v208_v55  ;;  %1079 = vmatprep.subr.mxu0 %v191_v56  ;;  %v241_v54 = vld [vmem:[%s2087_s1 + $0x628] sm:$0xff]  ;;  %v256_v56 = vld [vmem:[%s2087_s1 + $0x6a0] sm:$0xff] }
  0x6e   :  { %1114 = vmatprep.subr.mxu1 %v223_v57  ;;  %1080 = vmatpush3.msra.mxu0 %v175_v58  ;;  %v273_v55 = vld [vmem:[%s2087_s1 + $0x728] sm:$0xff]  ;;  %v288_v57 = vld [vmem:[%s2087_s1 + $0x7a0] sm:$0xff] }
  0x6f   :  { %1115 = vmatpush3.msra.mxu1 %v207_v59  ;;  %1081 = vmatprep.subr.mxu0 %v190_v60  ;;  %v240_v58 = vld [vmem:[%s2087_s1 + $0x620] sm:$0xff]  ;;  %v255_v60 = vld [vmem:[%s2087_s1 + $0x698] sm:$0xff] }
  0x70   :  { %1116 = vmatprep.subr.mxu1 %v222_v61  ;;  %1082 = vmatpush3.msra.mxu0 %v174_v62  ;;  %v272_v59 = vld [vmem:[%s2087_s1 + $0x720] sm:$0xff]  ;;  %v287_v61 = vld [vmem:[%s2087_s1 + $0x798] sm:$0xff] }
  0x71   :  { %1117 = vmatpush3.msra.mxu1 %v206_v63  ;;  %1083 = vmatprep.subr.mxu0 %v189_v0  ;;  %v239_v62 = vld [vmem:[%s2087_s1 + $0x618] sm:$0xff]  ;;  %v254_v0 = vld [vmem:[%s2087_s1 + $0x690] sm:$0xff] }
  0x72   :  { %1118 = vmatprep.subr.mxu1 %v221_v1  ;;  %1084 = vmatpush3.msra.mxu0 %v173_v2  ;;  %v271_v63 = vld [vmem:[%s2087_s1 + $0x718] sm:$0xff]  ;;  %v286_v1 = vld [vmem:[%s2087_s1 + $0x790] sm:$0xff] }
  0x73   :  { %1119 = vmatpush3.msra.mxu1 %v205_v3  ;;  %1085 = vmatprep.subr.mxu0 %v188_v4  ;;  %v238_v2 = vld [vmem:[%s2087_s1 + $0x610] sm:$0xff]  ;;  %v253_v4 = vld [vmem:[%s2087_s1 + $0x688] sm:$0xff] }
  0x74   :  { %1120 = vmatprep.subr.mxu1 %v220_v5  ;;  %1086 = vmatpush3.msra.mxu0 %v172_v6  ;;  %v270_v3 = vld [vmem:[%s2087_s1 + $0x710] sm:$0xff]  ;;  %v285_v5 = vld [vmem:[%s2087_s1 + $0x788] sm:$0xff] }
  0x75   :  { %646 = vmatprep.mubr.f32.mxu0 %v37_v7  ;;  %1121 = vmatpush3.msra.mxu1 %v204_v8  ;;  %v237_v6 = vld [vmem:[%s2087_s1 + $0x608] sm:$0xff]  ;;  %v252_v8 = vld [vmem:[%s2087_s1 + $0x680] sm:$0xff] }
  0x76   :  { %647 = vmatmul.mubr.f32.vlgmr.msra.gmra.mxu0 %v36_v9  ;;  %716 = vmatprep.mubr.f32.mxu1 %v39_v10  ;;  %v269_v7 = vld [vmem:[%s2087_s1 + $0x708] sm:$0xff]  ;;  %v284_v9 = vld [vmem:[%s2087_s1 + $0x780] sm:$0xff] }
  0x77   :  { %1125 = vmatprep.subr.mxu0 %v267_v11  ;;  %1160 = vmatprep.subr.mxu1 %v299_v12  ;;  %v236_v10 = vld [vmem:[%s2087_s1 + $0x600] sm:$0xff]  ;;  %v41_v11 = vld [vmem:[%s2086_s0 + $0x68] sm:$0xff] }
  0x78   :  { %717 = vmatmul.mubr.f32.vlgmr.msra.gmra.mxu1 %v38_v13  ;;  %1126 = vmatpush3.msra.mxu0 %v251_v14  ;;  %v268_v12 = vld [vmem:[%s2087_s1 + $0x700] sm:$0xff]  ;;  %v43_v13 = vld [vmem:[%s2086_s0 + $0x78] sm:$0xff]  ;;  %s300_s1 = sld [smem:[#allocation2]] }
  0x79   :  { %1161 = vmatpush3.msra.mxu1 %v283_v15  ;;  %1127 = vmatprep.subr.mxu0 %v266_v16  ;;  %v40_v14 = vld [vmem:[%s2086_s0 + $0x60] sm:$0xff]  ;;  %v42_v15 = vld [vmem:[%s2086_s0 + $0x70] sm:$0xff]  ;;  %s913_s0 = sld [smem:[#allocation2 + $0x1]] }
  0x7a   :  { %1162 = vmatprep.subr.mxu1 %v298_v17  ;;  %1128 = vmatpush3.msra.mxu0 %v250_v18 }
  0x7b   :  { %1163 = vmatpush3.msra.mxu1 %v282_v19  ;;  %1129 = vmatprep.subr.mxu0 %v265_v20 }
  0x7c   :  { %1164 = vmatprep.subr.mxu1 %v297_v21  ;;  %1130 = vmatpush3.msra.mxu0 %v249_v22 }
  0x7d   :  { %1165 = vmatpush3.msra.mxu1 %v281_v23  ;;  %1131 = vmatprep.subr.mxu0 %v264_v24 }
  0x7e   :  { %1166 = vmatprep.subr.mxu1 %v296_v25  ;;  %1132 = vmatpush3.msra.mxu0 %v248_v26  ;;  %v301_v21 = vstv %s300_s1 }
  0x7f   :  { %1167 = vmatpush3.msra.mxu1 %v280_v27  ;;  %1133 = vmatprep.subr.mxu0 %v263_v28 }
  0x80   :  { %1168 = vmatprep.subr.mxu1 %v295_v29  ;;  %1134 = vmatpush3.msra.mxu0 %v247_v30 }
  0x81   :  { %1169 = vmatpush3.msra.mxu1 %v279_v31  ;;  %1135 = vmatprep.subr.mxu0 %v262_v32 }
  0x82   :  { %1170 = vmatprep.subr.mxu1 %v294_v33  ;;  %1136 = vmatpush3.msra.mxu0 %v246_v34 }
  0x83   :  { %1171 = vmatpush3.msra.mxu1 %v278_v35  ;;  %1137 = vmatprep.subr.mxu0 %v261_v36 }
  0x84   :  { %1172 = vmatprep.subr.mxu1 %v293_v37  ;;  %1138 = vmatpush3.msra.mxu0 %v245_v38 }
  0x85   :  { %1173 = vmatpush3.msra.mxu1 %v277_v39  ;;  %1139 = vmatprep.subr.mxu0 %v260_v40 }
  0x86   :  { %1174 = vmatprep.subr.mxu1 %v292_v41  ;;  %1140 = vmatpush3.msra.mxu0 %v244_v42 }
  0x87   :  { %1175 = vmatpush3.msra.mxu1 %v276_v43  ;;  %1141 = vmatprep.subr.mxu0 %v259_v44 }
  0x88   :  { %1176 = vmatprep.subr.mxu1 %v291_v45  ;;  %1142 = vmatpush3.msra.mxu0 %v243_v46 }
  0x89   :  { %1177 = vmatpush3.msra.mxu1 %v275_v47  ;;  %1143 = vmatprep.subr.mxu0 %v258_v48 }
  0x8a   :  { %1178 = vmatprep.subr.mxu1 %v290_v49  ;;  %1144 = vmatpush3.msra.mxu0 %v242_v50 }
  0x8b   :  { %1179 = vmatpush3.msra.mxu1 %v274_v51  ;;  %1145 = vmatprep.subr.mxu0 %v257_v52 }
  0x8c   :  { %1180 = vmatprep.subr.mxu1 %v289_v53  ;;  %1146 = vmatpush3.msra.mxu0 %v241_v54 }
  0x8d   :  { %1181 = vmatpush3.msra.mxu1 %v273_v55  ;;  %1147 = vmatprep.subr.mxu0 %v256_v56 }
  0x8e   :  { %1182 = vmatprep.subr.mxu1 %v288_v57  ;;  %1148 = vmatpush3.msra.mxu0 %v240_v58 }
  0x8f   :  { %1183 = vmatpush3.msra.mxu1 %v272_v59  ;;  %1149 = vmatprep.subr.mxu0 %v255_v60 }
  0x90   :  { %1184 = vmatprep.subr.mxu1 %v287_v61  ;;  %1150 = vmatpush3.msra.mxu0 %v239_v62 }
  0x91   :  { %1185 = vmatpush3.msra.mxu1 %v271_v63  ;;  %1151 = vmatprep.subr.mxu0 %v254_v0 }
  0x92   :  { %1186 = vmatprep.subr.mxu1 %v286_v1  ;;  %1152 = vmatpush3.msra.mxu0 %v238_v2 }
  0x93   :  { %1187 = vmatpush3.msra.mxu1 %v270_v3  ;;  %1153 = vmatprep.subr.mxu0 %v253_v4 }
  0x94   :  { %1188 = vmatprep.subr.mxu1 %v285_v5  ;;  %1154 = vmatpush3.msra.mxu0 %v237_v6  ;;  %v886_v5 = vstv %s913_s0 }
  0x95   :  { %1189 = vmatpush3.msra.mxu1 %v269_v7  ;;  %1155 = vmatprep.subr.mxu0 %v252_v8  ;;  %v889_v7 = vstv %s914_s28 }
  0x96   :  { %1190 = vmatprep.subr.mxu1 %v284_v9  ;;  %1156 = vmatpush3.msra.mxu0 %v236_v10 }
  0x97   :  { %786 = vmatprep.mubr.f32.mxu0 %v41_v11  ;;  %1191 = vmatpush3.msra.mxu1 %v268_v12 }
  0x98   :  { %856 = vmatprep.mubr.f32.mxu1 %v43_v13  ;;  %787 = vmatmul.mubr.f32.vlgmr.msra.gmra.mxu0 %v40_v14 }
  0x99   :  { %857 = vmatmul.mubr.f32.vlgmr.msra.gmra.mxu1 %v42_v15 }
  0xf2   :  { %v947_v16 = vpop.f32.mrf.mxu0 }
  0xf4   :  { %v982_v17 = vpop.f32.mrf.mxu1  ;;  %v948_v18 = vpop.f32.mrf.mxu0 }
  0xf5   :  { %v949_v20 = vadd.f32 %v948_v18, %v947_v16 }
  0xf6   :  { %v983_v22 = vpop.f32.mrf.mxu1 }
  0xf7   :  { %v369_v25 = vadd.f32 %v949_v20, %v301_v21  ;;  %v984_v26 = vadd.f32 %v983_v22, %v982_v17 }
  0xf9   :  { %v439_v30 = vadd.f32 %v984_v26, %v369_v25 }
 0x114   :  { %v1017_v19 = vpop.f32.mrf.mxu0 }
 0x116   :  { %v1052_v23 = vpop.f32.mrf.mxu1  ;;  %v1018_v24 = vpop.f32.mrf.mxu0 }
 0x117   :  { %v1019_v28 = vadd.f32 %v1018_v24, %v1017_v19 }
 0x118   :  { %v1053_v29 = vpop.f32.mrf.mxu1 }
 0x119   :  { %v509_v33 = vadd.f32 %v1019_v28, %v439_v30  ;;  %v1054_v34 = vadd.f32 %v1053_v29, %v1052_v23 }
 0x11b   :  { %v579_v37 = vadd.f32 %v1054_v34, %v509_v33 }
 0x136   :  { %v1087_v27 = vpop.f32.mrf.mxu0 }
 0x138   :  { %v1122_v31 = vpop.f32.mrf.mxu1  ;;  %v1088_v32 = vpop.f32.mrf.mxu0 }
 0x139   :  { %v1089_v35 = vadd.f32 %v1088_v32, %v1087_v27 }
 0x13a   :  { %v1123_v36 = vpop.f32.mrf.mxu1 }
 0x13b   :  { %v649_v38 = vadd.f32 %v1089_v35, %v579_v37  ;;  %v1124_v39 = vadd.f32 %v1123_v36, %v1122_v31 }
 0x13d   :  { %v719_v44 = vadd.f32 %v1124_v39, %v649_v38 }
 0x158   :  { %v1157_v40 = vpop.f32.mrf.mxu0 }
 0x159   :  { %v1192_v41 = vpop.f32.mrf.mxu1 }
 0x15a   :  { %v1158_v42 = vpop.f32.mrf.mxu0 }
 0x15b   :  { %v1193_v43 = vpop.f32.mrf.mxu1  ;;  %v1159_v45 = vadd.f32 %v1158_v42, %v1157_v40 }
 0x15c   :  { %v1194_v47 = vadd.f32 %v1193_v43, %v1192_v41 }
 0x15d   :  { %v789_v46 = vadd.f32 %v1159_v45, %v719_v44 }
 0x15f   :  { %v859_v48 = vadd.f32 %v1194_v47, %v789_v46 }
 0x161   :  { %v863_v49 = vsel %vm862_vm0, %v859_v48, 0.0 }
 0x162   :  { %v864_v50 = vrot.slane %v863_v49, 4 }
 0x164   :  { %v865_v51 = vadd.f32 %v864_v50, %v863_v49 }
 0x166   :  { %v866_v52 = vrot.slane %v865_v51, 2 }
 0x168   :  { %v867_v53 = vadd.f32 %v866_v52, %v865_v51 }
 0x16a   :  { %v868_v54 = vrot.slane %v867_v53, 1 }
 0x16c   :  { %v869_v55 = vadd.f32 %v868_v54, %v867_v53 }
 0x16e   :  { %v871_v56 = vmul.f32 0.125, %v869_v55 }
 0x170   :  { %v872_v57 = vsub.f32 %v859_v48, %v871_v56 }
 0x172   :  { %v873_v58 = vmul.f32 %v872_v57, %v872_v57 }
 0x174   :  { %v874_v59 = vsel %vm862_vm0, %v873_v58, 0.0 }
 0x175   :  { %v875_v60 = vrot.slane %v874_v59, 4 }
 0x177   :  { %v876_v61 = vadd.f32 %v875_v60, %v874_v59 }
 0x179   :  { %v877_v62 = vrot.slane %v876_v61, 2 }
 0x17b   :  { %v878_v63 = vadd.f32 %v877_v62, %v876_v61 }
 0x17d   :  { %v879_v0 = vrot.slane %v878_v63, 1 }
 0x17f   :  { %v880_v1 = vadd.f32 %v879_v0, %v878_v63 }
 0x181   :  { %v881_v2 = vmul.f32 0.125, %v880_v1 }
 0x183   :  { %v883_v3 = vadd.f32 1e-05, %v881_v2 }
 0x185   :  { %1197 = vrsqrt.f32 %v883_v3 }
 0x192   :  { %v1198_v4 = vpop.eup %1197 }
 0x193   :  { %v885_v6 = vmul.f32 %v1198_v4, %v872_v57 }
 0x195   :  { %v887_v8 = vmul.f32 %v886_v5, %v885_v6 }
 0x197   :  { %v890_v9 = vadd.f32 %v889_v7, %v887_v8 }
 0x199   :  { %v891_v10 = vsub.f32 0.0, %v890_v9 }
 0x19b   :  { %v892_v11 = vmul.f32 1.442695, %v891_v10 }
 0x19d   :  { %1199 = vpow2.f32 %v892_v11 }
 0x1aa   :  { %v1200_v12 = vpop.eup %1199 }
 0x1ab   :  { %v894_v13 = vadd.f32 1.0, %v1200_v12 }
 0x1ad   :  { %1201 = vrcp.f32 %v894_v13 }
 0x1ba   :  { %v1202_v14 = vpop.eup %1201 }
 0x1bb   :  { %897 = vst.msk [vmem:[#allocation5] sm:$0xff] %vm862_vm0, %v1202_v14 }
 0x1bc   :  { %1226 = shalt.err (!%p1223_p9)
}
 0x1bd   :  { %907 = dma.vmem_to_hbm [thread:$0]  %s905_s30, 128, %s2089_s3, [#allocation3]  }
 0x1be   :  { %1237 = dma.done.wait [#allocation3], 128  }
 0x1bf   :  { %1238 = vsyncadd [#allocation3], 4294967168 }
 0x1c0   :  { %911 = vsyncpa [#allocation3], 1 }
 0x1c1   :  { %912 = vsyncpa [#allocation4], 1 }

</bundles_post_ra>
